<compile_context>
chip_gen: v5e
topology: v5e:2x2
jax: 0.10.0
libtpu: 0.0.40
codegen_flags: <defaults>
</compile_context>

<pallas_src>
import math

import jax
import jax.numpy as jnp
from jax.experimental import pallas as pl
from jax.experimental.pallas import tpu as pltpu


def _add3_kernel(x56_ref, x42_ref, x71_ref, out_ref):
    # x57 = x56 + x42 ; x72 = x71 + x57
    out_ref[...] = x71_ref[...] + (x56_ref[...] + x42_ref[...])


def _lane_dense_2d(total, orig_shape):
    """Pick a (rows, cols) flattening whose last dim is a multiple of 128."""
    lane = 128
    if total % lane == 0:
        cols = lane
        # Prefer wider trailing dims (bigger unmasked stores) while keeping
        # at least 8 rows so the sublane dim is not degenerate.
        for wider in (4096, 2048, 1024, 512, 256):
            if total % wider == 0 and total // wider >= 8:
                cols = wider
                break
        return total // cols, cols
    # Fallback for awkward sizes: keep the original trailing dim (still correct,
    # just masked stores on the lane axis).
    return math.prod(orig_shape[:-1]), orig_shape[-1]


def add3(x56, x42, x71):
    assert x56.shape == x42.shape == x71.shape
    assert x56.dtype == x42.dtype == x71.dtype
    orig_shape = x56.shape
    total = math.prod(orig_shape)
    rows, cols = _lane_dense_2d(total, orig_shape)

    # Contiguous reshapes: free (bitcast-level) in XLA, purely layout plumbing.
    a = x56.reshape(rows, cols)
    b = x42.reshape(rows, cols)
    c = x71.reshape(rows, cols)

    itemsize = jnp.dtype(x56.dtype).itemsize
    # Conservative VMEM budget: leave plenty of headroom under v7x's 64 MiB
    # physical / 32 MiB scoped default with 4 resident arrays.
    vmem_budget = 8 * 1024 * 1024

    if rows * cols * itemsize * 4 <= vmem_budget:
        # Small problem: single full-extent block, whole arrays resident in VMEM.
        out2d = pl.pallas_call(
            _add3_kernel,
            out_shape=jax.ShapeDtypeStruct((rows, cols), x56.dtype),
            in_specs=[pl.BlockSpec(memory_space=pltpu.MemorySpace.VMEM)] * 3,
            out_specs=pl.BlockSpec(memory_space=pltpu.MemorySpace.VMEM),
        )(a, b, c)
    else:
        # Large problem: 1-D row grid, big (8,128)-aligned tiles, BlockSpec
        # auto-pipelining (double buffered), axis "parallel" for megacore.
        tile_rows = 2048
        # 4 arrays (3 in + 1 out), each double-buffered.
        while tile_rows > 8 and tile_rows * cols * itemsize * 4 * 2 > vmem_budget:
            tile_rows //= 2
        grid = (pl.cdiv(rows, tile_rows),)
        out2d = pl.pallas_call(
            _add3_kernel,
            out_shape=jax.ShapeDtypeStruct((rows, cols), x56.dtype),
            grid=grid,
            in_specs=[pl.BlockSpec((tile_rows, cols), lambda i: (i, 0))] * 3,
            out_specs=pl.BlockSpec((tile_rows, cols), lambda i: (i, 0)),
            compiler_params=pltpu.CompilerParams(
                dimension_semantics=("parallel",)),
        )(a, b, c)

    return out2d.reshape(orig_shape)


if __name__ == "__main__":
    key = jax.random.PRNGKey(0)
    k1, k2, k3 = jax.random.split(key, 3)
    shape = (1, 24, 56, 56)  # matches the PyTorch module's tensors
    x56 = jax.random.normal(k1, shape, dtype=jnp.float32)
    x42 = jax.random.normal(k2, shape, dtype=jnp.float32)
    x71 = jax.random.normal(k3, shape, dtype=jnp.float32)

    out = add3(x56, x42, x71)
    jax.block_until_ready(out)

    # Correctness check against plain JAX reference.
    ref = x71 + (x56 + x42)
    assert out.shape == shape
    assert jnp.allclose(out, ref, atol=1e-6, rtol=1e-6)
    print("KERNEL_OK")
</pallas_src>

<mosaic_0001>
module attributes {stable_mosaic.version = 11 : i64} {
  func.func @_add3_kernel(%arg0: memref<147x512xf32, #tpu.memory_space<vmem>>, %arg1: memref<147x512xf32, #tpu.memory_space<vmem>>, %arg2: memref<147x512xf32, #tpu.memory_space<vmem>>, %arg3: memref<147x512xf32, #tpu.memory_space<vmem>>) attributes {dimension_semantics = [], scalar_prefetch = 0 : i64, scratch_operands = 0 : i64, tpu.core_type = #tpu.core_type<tc>} {
    %c0 = arith.constant 0 : index
    %c0_0 = arith.constant 0 : index
    %0 = vector.load %arg2[%c0, %c0_0] : memref<147x512xf32, #tpu.memory_space<vmem>>, vector<147x512xf32>
    %c0_1 = arith.constant 0 : index
    %c0_2 = arith.constant 0 : index
    %1 = vector.load %arg0[%c0_1, %c0_2] : memref<147x512xf32, #tpu.memory_space<vmem>>, vector<147x512xf32>
    %c0_3 = arith.constant 0 : index
    %c0_4 = arith.constant 0 : index
    %2 = vector.load %arg1[%c0_3, %c0_4] : memref<147x512xf32, #tpu.memory_space<vmem>>, vector<147x512xf32>
    %3 = arith.addf %1, %2 : vector<147x512xf32>
    %4 = arith.addf %0, %3 : vector<147x512xf32>
    %c0_5 = arith.constant 0 : index
    %c0_6 = arith.constant 0 : index
    %5 = vector.load %arg3[%c0_5, %c0_6] : memref<147x512xf32, #tpu.memory_space<vmem>>, vector<147x512xf32>
    tpu.vector_store %arg3[%c0_5, %c0_6], %4 {strides = array<i32>} : memref<147x512xf32, #tpu.memory_space<vmem>>, vector<147x512xf32>,
    return
  }
}

</mosaic_0001>

<bundles_post_ra>
// kernel: tpu_custom_call.1
= control target key start
LH: loop header
LB: loop body
LE: loop exit
PB: predicated region body
PF: predicated region fallthrough
CT: control target
= control target key end

     0   :  { %8 = vsyncpa [#allocation3], 0  ;;  %s696_s0 = inlined_call_operand.hbm [shape: f32[147,512], index: 0, kind: input, shape index: {}]   ;;  %s697_s1 = inlined_call_operand.hbm [shape: f32[147,512], index: 1, kind: input, shape index: {}]   ;;  %s698_s2 = inlined_call_operand.hbm [shape: f32[147,512], index: 2, kind: input, shape index: {}]   ;;  %s699_s3 = inlined_call_operand.hbm [shape: f32[147,512], index: 3, kind: output, shape index: {}]  }
   0x1   :  { %9 = vsyncpa [#allocation6], 0 }
   0x2   :  { %10 = vsyncpa [#allocation4], 0  ;;  %s28_s14 = sshll.u32 %s697_s1, 4  ;;  %s646_s15 = smov [#allocation5]   ;;  %s29_s14 = int_to_ptr.hbm [resolvable:$true] %s28_s14 }
   0x3   :  { %s30_s16 = sshll.u32 %s646_s15, 4  ;;  %s15_s19 = sshll.u32 %s696_s0, 4  ;;  %s31_s16 = int_to_ptr.vmem [resolvable:$true] %s30_s16  ;;  %s16_s19 = int_to_ptr.hbm [resolvable:$true] %s15_s19 }
   0x4   :  { %s647_s20 = smov 512   ;;  %s648_s21 = smov 32  }
   0x5   :  { %36 = dma.hbm_to_vmem [thread:$0]  %s29_s14, 9728, %s31_s16, [#allocation6], %s647_s20, %s647_s20, %s648_s21  }
   0x6   :  { %s649_s22 = smov [#allocation2]   ;;  %s41_s1 = sshll.u32 %s698_s2, 4  ;;  %s42_s1 = int_to_ptr.hbm [resolvable:$true] %s41_s1 }
   0x7   :  { %s17_s23 = sshll.u32 %s649_s22, 4  ;;  %s650_s0 = smov [#allocation7]   ;;  %s18_s23 = int_to_ptr.vmem [resolvable:$true] %s17_s23 }
   0x8   :  { %23 = dma.hbm_to_vmem [thread:$0]  %s16_s19, 9728, %s18_s23, [#allocation3], %s647_s20, %s647_s20, %s648_s21  }
   0x9   :  { %s43_s26 = sshll.u32 %s650_s0, 4  ;;  %s44_s26 = int_to_ptr.vmem [resolvable:$true] %s43_s26 }
   0xa   :  { %49 = dma.hbm_to_vmem [thread:$0]  %s42_s1, 9728, %s44_s26, [#allocation6], %s647_s20, %s647_s20, %s648_s21  }
   0xb   :  { %640 = dma.done.wait [#allocation3], 9728  }
   0xc   :  { %641 = vsyncadd [#allocation3], 4294957568 }
   0xd   :  { %642 = dma.done.wait [#allocation6], 19456  }
   0xe   :  { %643 = vsyncadd [#allocation6], 4294947840  ;;  %v62_v0 = vld [vmem:[#allocation7] sm:$0xff]  ;;  %v63_v4 = vld [vmem:[#allocation7 + $0x8] sm:$0xff]  ;;  %s524_s28 = sshll.u32 %s699_s3, 4  ;;  %s651_s29 = smov [#allocation8]   ;;  %s525_s28 = int_to_ptr.hbm [resolvable:$true] %s524_s28 }
   0xf   :  { %v138_v1 = vld [vmem:[#allocation2] sm:$0xff]  ;;  %v139_v5 = vld [vmem:[#allocation2 + $0x8] sm:$0xff]  ;;  %v64_v8 = vld [vmem:[#allocation7 + $0x10] sm:$0xff]  ;;  %s522_s30 = sshll.u32 %s651_s29, 4  ;;  %s523_s30 = int_to_ptr.vmem [resolvable:$true] %s522_s30 }
  0x10   :  { %v214_v2 = vld [vmem:[#allocation5] sm:$0xff]  ;;  %v215_v6 = vld [vmem:[#allocation5 + $0x8] sm:$0xff]  ;;  %v140_v9 = vld [vmem:[#allocation2 + $0x10] sm:$0xff] }
  0x11   :  { %v290_v3 = vadd.f32 %v214_v2, %v138_v1  ;;  %v291_v7 = vadd.f32 %v215_v6, %v139_v5  ;;  %v216_v10 = vld [vmem:[#allocation5 + $0x10] sm:$0xff]  ;;  %v65_v13 = vld [vmem:[#allocation7 + $0x18] sm:$0xff]  ;;  %v66_v18 = vld [vmem:[#allocation7 + $0x20] sm:$0xff] }
  0x12   :  { %v292_v12 = vadd.f32 %v216_v10, %v140_v9  ;;  %v141_v14 = vld [vmem:[#allocation2 + $0x18] sm:$0xff]  ;;  %v142_v19 = vld [vmem:[#allocation2 + $0x20] sm:$0xff]  ;;  %v67_v23 = vld [vmem:[#allocation7 + $0x28] sm:$0xff] }
  0x13   :  { %v366_v11 = vadd.f32 %v290_v3, %v62_v0  ;;  %v217_v15 = vld [vmem:[#allocation5 + $0x18] sm:$0xff]  ;;  %v367_v16 = vadd.f32 %v291_v7, %v63_v4  ;;  %v218_v20 = vld [vmem:[#allocation5 + $0x20] sm:$0xff]  ;;  %v143_v24 = vld [vmem:[#allocation2 + $0x28] sm:$0xff] }
  0x14   :  { %v293_v17 = vadd.f32 %v217_v15, %v141_v14  ;;  %v368_v21 = vadd.f32 %v292_v12, %v64_v8  ;;  %v294_v22 = vadd.f32 %v218_v20, %v142_v19  ;;  %v219_v25 = vld [vmem:[#allocation5 + $0x28] sm:$0xff]  ;;  %v68_v28 = vld [vmem:[#allocation7 + $0x30] sm:$0xff]  ;;  %v69_v33 = vld [vmem:[#allocation7 + $0x38] sm:$0xff] }
  0x15   :  { %442 = vst [vmem:[#allocation8] sm:$0xff] %v366_v11  ;;  %v295_v27 = vadd.f32 %v219_v25, %v143_v24  ;;  %v144_v29 = vld [vmem:[#allocation2 + $0x30] sm:$0xff]  ;;  %v145_v34 = vld [vmem:[#allocation2 + $0x38] sm:$0xff]  ;;  %v70_v38 = vld [vmem:[#allocation7 + $0x40] sm:$0xff] }
  0x16   :  { %443 = vst [vmem:[#allocation8 + $0x8] sm:$0xff] %v367_v16  ;;  %v369_v26 = vadd.f32 %v293_v17, %v65_v13  ;;  %v220_v30 = vld [vmem:[#allocation5 + $0x30] sm:$0xff]  ;;  %v370_v31 = vadd.f32 %v294_v22, %v66_v18  ;;  %v221_v35 = vld [vmem:[#allocation5 + $0x38] sm:$0xff]  ;;  %v146_v39 = vld [vmem:[#allocation2 + $0x40] sm:$0xff] }
  0x17   :  { %444 = vst [vmem:[#allocation8 + $0x10] sm:$0xff] %v368_v21  ;;  %v296_v32 = vadd.f32 %v220_v30, %v144_v29  ;;  %v371_v36 = vadd.f32 %v295_v27, %v67_v23  ;;  %v297_v37 = vadd.f32 %v221_v35, %v145_v34  ;;  %v222_v40 = vld [vmem:[#allocation5 + $0x40] sm:$0xff]  ;;  %v71_v43 = vld [vmem:[#allocation7 + $0x48] sm:$0xff]  ;;  %v72_v48 = vld [vmem:[#allocation7 + $0x50] sm:$0xff] }
  0x18   :  { %445 = vst [vmem:[#allocation8 + $0x18] sm:$0xff] %v369_v26  ;;  %v298_v42 = vadd.f32 %v222_v40, %v146_v39  ;;  %v147_v44 = vld [vmem:[#allocation2 + $0x48] sm:$0xff]  ;;  %v148_v49 = vld [vmem:[#allocation2 + $0x50] sm:$0xff]  ;;  %v73_v53 = vld [vmem:[#allocation7 + $0x58] sm:$0xff] }
  0x19   :  { %446 = vst [vmem:[#allocation8 + $0x20] sm:$0xff] %v370_v31  ;;  %v372_v41 = vadd.f32 %v296_v32, %v68_v28  ;;  %v223_v45 = vld [vmem:[#allocation5 + $0x48] sm:$0xff]  ;;  %v373_v46 = vadd.f32 %v297_v37, %v69_v33  ;;  %v224_v50 = vld [vmem:[#allocation5 + $0x50] sm:$0xff]  ;;  %v149_v54 = vld [vmem:[#allocation2 + $0x58] sm:$0xff] }
  0x1a   :  { %447 = vst [vmem:[#allocation8 + $0x28] sm:$0xff] %v371_v36  ;;  %v299_v47 = vadd.f32 %v223_v45, %v147_v44  ;;  %v374_v51 = vadd.f32 %v298_v42, %v70_v38  ;;  %v300_v52 = vadd.f32 %v224_v50, %v148_v49  ;;  %v225_v55 = vld [vmem:[#allocation5 + $0x58] sm:$0xff]  ;;  %v74_v58 = vld [vmem:[#allocation7 + $0x60] sm:$0xff]  ;;  %v75_v63 = vld [vmem:[#allocation7 + $0x68] sm:$0xff] }
  0x1b   :  { %448 = vst [vmem:[#allocation8 + $0x30] sm:$0xff] %v372_v41  ;;  %v301_v57 = vadd.f32 %v225_v55, %v149_v54  ;;  %v150_v59 = vld [vmem:[#allocation2 + $0x60] sm:$0xff]  ;;  %v151_v0 = vld [vmem:[#allocation2 + $0x68] sm:$0xff]  ;;  %v76_v4 = vld [vmem:[#allocation7 + $0x70] sm:$0xff] }
  0x1c   :  { %449 = vst [vmem:[#allocation8 + $0x38] sm:$0xff] %v373_v46  ;;  %v375_v56 = vadd.f32 %v299_v47, %v71_v43  ;;  %v226_v60 = vld [vmem:[#allocation5 + $0x60] sm:$0xff]  ;;  %v376_v61 = vadd.f32 %v300_v52, %v72_v48  ;;  %v227_v1 = vld [vmem:[#allocation5 + $0x68] sm:$0xff]  ;;  %v152_v5 = vld [vmem:[#allocation2 + $0x70] sm:$0xff] }
  0x1d   :  { %450 = vst [vmem:[#allocation8 + $0x40] sm:$0xff] %v374_v51  ;;  %v302_v62 = vadd.f32 %v226_v60, %v150_v59  ;;  %v377_v2 = vadd.f32 %v301_v57, %v73_v53  ;;  %v303_v3 = vadd.f32 %v227_v1, %v151_v0  ;;  %v228_v6 = vld [vmem:[#allocation5 + $0x70] sm:$0xff]  ;;  %v77_v9 = vld [vmem:[#allocation7 + $0x78] sm:$0xff]  ;;  %v78_v14 = vld [vmem:[#allocation7 + $0x80] sm:$0xff] }
  0x1e   :  { %451 = vst [vmem:[#allocation8 + $0x48] sm:$0xff] %v375_v56  ;;  %v304_v8 = vadd.f32 %v228_v6, %v152_v5  ;;  %v153_v10 = vld [vmem:[#allocation2 + $0x78] sm:$0xff]  ;;  %v154_v15 = vld [vmem:[#allocation2 + $0x80] sm:$0xff]  ;;  %v79_v19 = vld [vmem:[#allocation7 + $0x88] sm:$0xff] }
  0x1f   :  { %452 = vst [vmem:[#allocation8 + $0x50] sm:$0xff] %v376_v61  ;;  %v378_v7 = vadd.f32 %v302_v62, %v74_v58  ;;  %v229_v11 = vld [vmem:[#allocation5 + $0x78] sm:$0xff]  ;;  %v379_v12 = vadd.f32 %v303_v3, %v75_v63  ;;  %v230_v16 = vld [vmem:[#allocation5 + $0x80] sm:$0xff]  ;;  %v155_v20 = vld [vmem:[#allocation2 + $0x88] sm:$0xff] }
  0x20   :  { %453 = vst [vmem:[#allocation8 + $0x58] sm:$0xff] %v377_v2  ;;  %v305_v13 = vadd.f32 %v229_v11, %v153_v10  ;;  %v380_v17 = vadd.f32 %v304_v8, %v76_v4  ;;  %v306_v18 = vadd.f32 %v230_v16, %v154_v15  ;;  %v231_v21 = vld [vmem:[#allocation5 + $0x88] sm:$0xff]  ;;  %v80_v24 = vld [vmem:[#allocation7 + $0x90] sm:$0xff]  ;;  %v81_v29 = vld [vmem:[#allocation7 + $0x98] sm:$0xff] }
  0x21   :  { %454 = vst [vmem:[#allocation8 + $0x60] sm:$0xff] %v378_v7  ;;  %v307_v23 = vadd.f32 %v231_v21, %v155_v20  ;;  %v156_v25 = vld [vmem:[#allocation2 + $0x90] sm:$0xff]  ;;  %v157_v30 = vld [vmem:[#allocation2 + $0x98] sm:$0xff]  ;;  %v82_v34 = vld [vmem:[#allocation7 + $0xa0] sm:$0xff] }
  0x22   :  { %455 = vst [vmem:[#allocation8 + $0x68] sm:$0xff] %v379_v12  ;;  %v381_v22 = vadd.f32 %v305_v13, %v77_v9  ;;  %v232_v26 = vld [vmem:[#allocation5 + $0x90] sm:$0xff]  ;;  %v382_v27 = vadd.f32 %v306_v18, %v78_v14  ;;  %v233_v31 = vld [vmem:[#allocation5 + $0x98] sm:$0xff]  ;;  %v158_v35 = vld [vmem:[#allocation2 + $0xa0] sm:$0xff] }
  0x23   :  { %456 = vst [vmem:[#allocation8 + $0x70] sm:$0xff] %v380_v17  ;;  %v308_v28 = vadd.f32 %v232_v26, %v156_v25  ;;  %v383_v32 = vadd.f32 %v307_v23, %v79_v19  ;;  %v309_v33 = vadd.f32 %v233_v31, %v157_v30  ;;  %v234_v36 = vld [vmem:[#allocation5 + $0xa0] sm:$0xff]  ;;  %v83_v39 = vld [vmem:[#allocation7 + $0xa8] sm:$0xff]  ;;  %v84_v44 = vld [vmem:[#allocation7 + $0xb0] sm:$0xff] }
  0x24   :  { %457 = vst [vmem:[#allocation8 + $0x78] sm:$0xff] %v381_v22  ;;  %v310_v38 = vadd.f32 %v234_v36, %v158_v35  ;;  %v159_v40 = vld [vmem:[#allocation2 + $0xa8] sm:$0xff]  ;;  %v160_v45 = vld [vmem:[#allocation2 + $0xb0] sm:$0xff]  ;;  %v85_v49 = vld [vmem:[#allocation7 + $0xb8] sm:$0xff] }
  0x25   :  { %458 = vst [vmem:[#allocation8 + $0x80] sm:$0xff] %v382_v27  ;;  %v384_v37 = vadd.f32 %v308_v28, %v80_v24  ;;  %v235_v41 = vld [vmem:[#allocation5 + $0xa8] sm:$0xff]  ;;  %v385_v42 = vadd.f32 %v309_v33, %v81_v29  ;;  %v236_v46 = vld [vmem:[#allocation5 + $0xb0] sm:$0xff]  ;;  %v161_v50 = vld [vmem:[#allocation2 + $0xb8] sm:$0xff] }
  0x26   :  { %459 = vst [vmem:[#allocation8 + $0x88] sm:$0xff] %v383_v32  ;;  %v311_v43 = vadd.f32 %v235_v41, %v159_v40  ;;  %v386_v47 = vadd.f32 %v310_v38, %v82_v34  ;;  %v312_v48 = vadd.f32 %v236_v46, %v160_v45  ;;  %v237_v51 = vld [vmem:[#allocation5 + $0xb8] sm:$0xff]  ;;  %v86_v54 = vld [vmem:[#allocation7 + $0xc0] sm:$0xff]  ;;  %v87_v59 = vld [vmem:[#allocation7 + $0xc8] sm:$0xff] }
  0x27   :  { %460 = vst [vmem:[#allocation8 + $0x90] sm:$0xff] %v384_v37  ;;  %v313_v53 = vadd.f32 %v237_v51, %v161_v50  ;;  %v162_v55 = vld [vmem:[#allocation2 + $0xc0] sm:$0xff]  ;;  %v163_v60 = vld [vmem:[#allocation2 + $0xc8] sm:$0xff]  ;;  %v88_v0 = vld [vmem:[#allocation7 + $0xd0] sm:$0xff] }
  0x28   :  { %461 = vst [vmem:[#allocation8 + $0x98] sm:$0xff] %v385_v42  ;;  %v387_v52 = vadd.f32 %v311_v43, %v83_v39  ;;  %v238_v56 = vld [vmem:[#allocation5 + $0xc0] sm:$0xff]  ;;  %v388_v57 = vadd.f32 %v312_v48, %v84_v44  ;;  %v239_v61 = vld [vmem:[#allocation5 + $0xc8] sm:$0xff]  ;;  %v164_v1 = vld [vmem:[#allocation2 + $0xd0] sm:$0xff] }
  0x29   :  { %462 = vst [vmem:[#allocation8 + $0xa0] sm:$0xff] %v386_v47  ;;  %v314_v58 = vadd.f32 %v238_v56, %v162_v55  ;;  %v389_v62 = vadd.f32 %v313_v53, %v85_v49  ;;  %v315_v63 = vadd.f32 %v239_v61, %v163_v60  ;;  %v240_v2 = vld [vmem:[#allocation5 + $0xd0] sm:$0xff]  ;;  %v89_v5 = vld [vmem:[#allocation7 + $0xd8] sm:$0xff]  ;;  %v90_v10 = vld [vmem:[#allocation7 + $0xe0] sm:$0xff] }
  0x2a   :  { %463 = vst [vmem:[#allocation8 + $0xa8] sm:$0xff] %v387_v52  ;;  %v316_v4 = vadd.f32 %v240_v2, %v164_v1  ;;  %v165_v6 = vld [vmem:[#allocation2 + $0xd8] sm:$0xff]  ;;  %v166_v11 = vld [vmem:[#allocation2 + $0xe0] sm:$0xff]  ;;  %v91_v15 = vld [vmem:[#allocation7 + $0xe8] sm:$0xff] }
  0x2b   :  { %464 = vst [vmem:[#allocation8 + $0xb0] sm:$0xff] %v388_v57  ;;  %v390_v3 = vadd.f32 %v314_v58, %v86_v54  ;;  %v241_v7 = vld [vmem:[#allocation5 + $0xd8] sm:$0xff]  ;;  %v391_v8 = vadd.f32 %v315_v63, %v87_v59  ;;  %v242_v12 = vld [vmem:[#allocation5 + $0xe0] sm:$0xff]  ;;  %v167_v16 = vld [vmem:[#allocation2 + $0xe8] sm:$0xff] }
  0x2c   :  { %465 = vst [vmem:[#allocation8 + $0xb8] sm:$0xff] %v389_v62  ;;  %v317_v9 = vadd.f32 %v241_v7, %v165_v6  ;;  %v392_v13 = vadd.f32 %v316_v4, %v88_v0  ;;  %v318_v14 = vadd.f32 %v242_v12, %v166_v11  ;;  %v243_v17 = vld [vmem:[#allocation5 + $0xe8] sm:$0xff]  ;;  %v92_v20 = vld [vmem:[#allocation7 + $0xf0] sm:$0xff]  ;;  %v93_v25 = vld [vmem:[#allocation7 + $0xf8] sm:$0xff] }
  0x2d   :  { %466 = vst [vmem:[#allocation8 + $0xc0] sm:$0xff] %v390_v3  ;;  %v319_v19 = vadd.f32 %v243_v17, %v167_v16  ;;  %v168_v21 = vld [vmem:[#allocation2 + $0xf0] sm:$0xff]  ;;  %v169_v26 = vld [vmem:[#allocation2 + $0xf8] sm:$0xff]  ;;  %v94_v30 = vld [vmem:[#allocation7 + $0x100] sm:$0xff] }
  0x2e   :  { %467 = vst [vmem:[#allocation8 + $0xc8] sm:$0xff] %v391_v8  ;;  %v393_v18 = vadd.f32 %v317_v9, %v89_v5  ;;  %v244_v22 = vld [vmem:[#allocation5 + $0xf0] sm:$0xff]  ;;  %v394_v23 = vadd.f32 %v318_v14, %v90_v10  ;;  %v245_v27 = vld [vmem:[#allocation5 + $0xf8] sm:$0xff]  ;;  %v170_v31 = vld [vmem:[#allocation2 + $0x100] sm:$0xff] }
  0x2f   :  { %468 = vst [vmem:[#allocation8 + $0xd0] sm:$0xff] %v392_v13  ;;  %v320_v24 = vadd.f32 %v244_v22, %v168_v21  ;;  %v395_v28 = vadd.f32 %v319_v19, %v91_v15  ;;  %v321_v29 = vadd.f32 %v245_v27, %v169_v26  ;;  %v246_v32 = vld [vmem:[#allocation5 + $0x100] sm:$0xff]  ;;  %v95_v35 = vld [vmem:[#allocation7 + $0x108] sm:$0xff]  ;;  %v96_v40 = vld [vmem:[#allocation7 + $0x110] sm:$0xff] }
  0x30   :  { %469 = vst [vmem:[#allocation8 + $0xd8] sm:$0xff] %v393_v18  ;;  %v322_v34 = vadd.f32 %v246_v32, %v170_v31  ;;  %v171_v36 = vld [vmem:[#allocation2 + $0x108] sm:$0xff]  ;;  %v172_v41 = vld [vmem:[#allocation2 + $0x110] sm:$0xff]  ;;  %v97_v45 = vld [vmem:[#allocation7 + $0x118] sm:$0xff] }
  0x31   :  { %470 = vst [vmem:[#allocation8 + $0xe0] sm:$0xff] %v394_v23  ;;  %v396_v33 = vadd.f32 %v320_v24, %v92_v20  ;;  %v247_v37 = vld [vmem:[#allocation5 + $0x108] sm:$0xff]  ;;  %v397_v38 = vadd.f32 %v321_v29, %v93_v25  ;;  %v248_v42 = vld [vmem:[#allocation5 + $0x110] sm:$0xff]  ;;  %v173_v46 = vld [vmem:[#allocation2 + $0x118] sm:$0xff] }
  0x32   :  { %471 = vst [vmem:[#allocation8 + $0xe8] sm:$0xff] %v395_v28  ;;  %v323_v39 = vadd.f32 %v247_v37, %v171_v36  ;;  %v398_v43 = vadd.f32 %v322_v34, %v94_v30  ;;  %v324_v44 = vadd.f32 %v248_v42, %v172_v41  ;;  %v249_v47 = vld [vmem:[#allocation5 + $0x118] sm:$0xff]  ;;  %v98_v50 = vld [vmem:[#allocation7 + $0x120] sm:$0xff]  ;;  %v99_v55 = vld [vmem:[#allocation7 + $0x128] sm:$0xff] }
  0x33   :  { %472 = vst [vmem:[#allocation8 + $0xf0] sm:$0xff] %v396_v33  ;;  %v325_v49 = vadd.f32 %v249_v47, %v173_v46  ;;  %v174_v51 = vld [vmem:[#allocation2 + $0x120] sm:$0xff]  ;;  %v175_v56 = vld [vmem:[#allocation2 + $0x128] sm:$0xff]  ;;  %v100_v60 = vld [vmem:[#allocation7 + $0x130] sm:$0xff] }
  0x34   :  { %473 = vst [vmem:[#allocation8 + $0xf8] sm:$0xff] %v397_v38  ;;  %v399_v48 = vadd.f32 %v323_v39, %v95_v35  ;;  %v250_v52 = vld [vmem:[#allocation5 + $0x120] sm:$0xff]  ;;  %v400_v53 = vadd.f32 %v324_v44, %v96_v40  ;;  %v251_v57 = vld [vmem:[#allocation5 + $0x128] sm:$0xff]  ;;  %v176_v61 = vld [vmem:[#allocation2 + $0x130] sm:$0xff] }
  0x35   :  { %474 = vst [vmem:[#allocation8 + $0x100] sm:$0xff] %v398_v43  ;;  %v326_v54 = vadd.f32 %v250_v52, %v174_v51  ;;  %v401_v58 = vadd.f32 %v325_v49, %v97_v45  ;;  %v327_v59 = vadd.f32 %v251_v57, %v175_v56  ;;  %v252_v62 = vld [vmem:[#allocation5 + $0x130] sm:$0xff]  ;;  %v101_v1 = vld [vmem:[#allocation7 + $0x138] sm:$0xff]  ;;  %v102_v6 = vld [vmem:[#allocation7 + $0x140] sm:$0xff] }
  0x36   :  { %475 = vst [vmem:[#allocation8 + $0x108] sm:$0xff] %v399_v48  ;;  %v328_v0 = vadd.f32 %v252_v62, %v176_v61  ;;  %v177_v2 = vld [vmem:[#allocation2 + $0x138] sm:$0xff]  ;;  %v178_v7 = vld [vmem:[#allocation2 + $0x140] sm:$0xff]  ;;  %v103_v11 = vld [vmem:[#allocation7 + $0x148] sm:$0xff] }
  0x37   :  { %476 = vst [vmem:[#allocation8 + $0x110] sm:$0xff] %v400_v53  ;;  %v402_v63 = vadd.f32 %v326_v54, %v98_v50  ;;  %v253_v3 = vld [vmem:[#allocation5 + $0x138] sm:$0xff]  ;;  %v403_v4 = vadd.f32 %v327_v59, %v99_v55  ;;  %v254_v8 = vld [vmem:[#allocation5 + $0x140] sm:$0xff]  ;;  %v179_v12 = vld [vmem:[#allocation2 + $0x148] sm:$0xff] }
  0x38   :  { %477 = vst [vmem:[#allocation8 + $0x118] sm:$0xff] %v401_v58  ;;  %v329_v5 = vadd.f32 %v253_v3, %v177_v2  ;;  %v404_v9 = vadd.f32 %v328_v0, %v100_v60  ;;  %v330_v10 = vadd.f32 %v254_v8, %v178_v7  ;;  %v255_v13 = vld [vmem:[#allocation5 + $0x148] sm:$0xff]  ;;  %v104_v16 = vld [vmem:[#allocation7 + $0x150] sm:$0xff]  ;;  %v105_v21 = vld [vmem:[#allocation7 + $0x158] sm:$0xff] }
  0x39   :  { %478 = vst [vmem:[#allocation8 + $0x120] sm:$0xff] %v402_v63  ;;  %v331_v15 = vadd.f32 %v255_v13, %v179_v12  ;;  %v180_v17 = vld [vmem:[#allocation2 + $0x150] sm:$0xff]  ;;  %v181_v22 = vld [vmem:[#allocation2 + $0x158] sm:$0xff]  ;;  %v106_v26 = vld [vmem:[#allocation7 + $0x160] sm:$0xff] }
  0x3a   :  { %479 = vst [vmem:[#allocation8 + $0x128] sm:$0xff] %v403_v4  ;;  %v405_v14 = vadd.f32 %v329_v5, %v101_v1  ;;  %v256_v18 = vld [vmem:[#allocation5 + $0x150] sm:$0xff]  ;;  %v406_v19 = vadd.f32 %v330_v10, %v102_v6  ;;  %v257_v23 = vld [vmem:[#allocation5 + $0x158] sm:$0xff]  ;;  %v182_v27 = vld [vmem:[#allocation2 + $0x160] sm:$0xff] }
  0x3b   :  { %480 = vst [vmem:[#allocation8 + $0x130] sm:$0xff] %v404_v9  ;;  %v332_v20 = vadd.f32 %v256_v18, %v180_v17  ;;  %v407_v24 = vadd.f32 %v331_v15, %v103_v11  ;;  %v333_v25 = vadd.f32 %v257_v23, %v181_v22  ;;  %v258_v28 = vld [vmem:[#allocation5 + $0x160] sm:$0xff]  ;;  %v107_v31 = vld [vmem:[#allocation7 + $0x168] sm:$0xff]  ;;  %v108_v36 = vld [vmem:[#allocation7 + $0x170] sm:$0xff] }
  0x3c   :  { %481 = vst [vmem:[#allocation8 + $0x138] sm:$0xff] %v405_v14  ;;  %v334_v30 = vadd.f32 %v258_v28, %v182_v27  ;;  %v183_v32 = vld [vmem:[#allocation2 + $0x168] sm:$0xff]  ;;  %v184_v37 = vld [vmem:[#allocation2 + $0x170] sm:$0xff]  ;;  %v109_v41 = vld [vmem:[#allocation7 + $0x178] sm:$0xff] }
  0x3d   :  { %482 = vst [vmem:[#allocation8 + $0x140] sm:$0xff] %v406_v19  ;;  %v408_v29 = vadd.f32 %v332_v20, %v104_v16  ;;  %v259_v33 = vld [vmem:[#allocation5 + $0x168] sm:$0xff]  ;;  %v409_v34 = vadd.f32 %v333_v25, %v105_v21  ;;  %v260_v38 = vld [vmem:[#allocation5 + $0x170] sm:$0xff]  ;;  %v185_v42 = vld [vmem:[#allocation2 + $0x178] sm:$0xff] }
  0x3e   :  { %483 = vst [vmem:[#allocation8 + $0x148] sm:$0xff] %v407_v24  ;;  %v335_v35 = vadd.f32 %v259_v33, %v183_v32  ;;  %v410_v39 = vadd.f32 %v334_v30, %v106_v26  ;;  %v336_v40 = vadd.f32 %v260_v38, %v184_v37  ;;  %v261_v43 = vld [vmem:[#allocation5 + $0x178] sm:$0xff]  ;;  %v110_v46 = vld [vmem:[#allocation7 + $0x180] sm:$0xff]  ;;  %v111_v51 = vld [vmem:[#allocation7 + $0x188] sm:$0xff] }
  0x3f   :  { %484 = vst [vmem:[#allocation8 + $0x150] sm:$0xff] %v408_v29  ;;  %v337_v45 = vadd.f32 %v261_v43, %v185_v42  ;;  %v186_v47 = vld [vmem:[#allocation2 + $0x180] sm:$0xff]  ;;  %v187_v52 = vld [vmem:[#allocation2 + $0x188] sm:$0xff]  ;;  %v112_v56 = vld [vmem:[#allocation7 + $0x190] sm:$0xff] }
  0x40   :  { %485 = vst [vmem:[#allocation8 + $0x158] sm:$0xff] %v409_v34  ;;  %v411_v44 = vadd.f32 %v335_v35, %v107_v31  ;;  %v262_v48 = vld [vmem:[#allocation5 + $0x180] sm:$0xff]  ;;  %v412_v49 = vadd.f32 %v336_v40, %v108_v36  ;;  %v263_v53 = vld [vmem:[#allocation5 + $0x188] sm:$0xff]  ;;  %v188_v57 = vld [vmem:[#allocation2 + $0x190] sm:$0xff] }
  0x41   :  { %486 = vst [vmem:[#allocation8 + $0x160] sm:$0xff] %v410_v39  ;;  %v338_v50 = vadd.f32 %v262_v48, %v186_v47  ;;  %v413_v54 = vadd.f32 %v337_v45, %v109_v41  ;;  %v339_v55 = vadd.f32 %v263_v53, %v187_v52  ;;  %v264_v58 = vld [vmem:[#allocation5 + $0x190] sm:$0xff]  ;;  %v113_v61 = vld [vmem:[#allocation7 + $0x198] sm:$0xff]  ;;  %v114_v2 = vld [vmem:[#allocation7 + $0x1a0] sm:$0xff] }
  0x42   :  { %487 = vst [vmem:[#allocation8 + $0x168] sm:$0xff] %v411_v44  ;;  %v340_v60 = vadd.f32 %v264_v58, %v188_v57  ;;  %v189_v62 = vld [vmem:[#allocation2 + $0x198] sm:$0xff]  ;;  %v190_v3 = vld [vmem:[#allocation2 + $0x1a0] sm:$0xff]  ;;  %v115_v7 = vld [vmem:[#allocation7 + $0x1a8] sm:$0xff] }
  0x43   :  { %488 = vst [vmem:[#allocation8 + $0x170] sm:$0xff] %v412_v49  ;;  %v414_v59 = vadd.f32 %v338_v50, %v110_v46  ;;  %v265_v63 = vld [vmem:[#allocation5 + $0x198] sm:$0xff]  ;;  %v415_v0 = vadd.f32 %v339_v55, %v111_v51  ;;  %v266_v4 = vld [vmem:[#allocation5 + $0x1a0] sm:$0xff]  ;;  %v191_v8 = vld [vmem:[#allocation2 + $0x1a8] sm:$0xff] }
  0x44   :  { %489 = vst [vmem:[#allocation8 + $0x178] sm:$0xff] %v413_v54  ;;  %v341_v1 = vadd.f32 %v265_v63, %v189_v62  ;;  %v416_v5 = vadd.f32 %v340_v60, %v112_v56  ;;  %v342_v6 = vadd.f32 %v266_v4, %v190_v3  ;;  %v267_v9 = vld [vmem:[#allocation5 + $0x1a8] sm:$0xff]  ;;  %v116_v12 = vld [vmem:[#allocation7 + $0x1b0] sm:$0xff]  ;;  %v117_v17 = vld [vmem:[#allocation7 + $0x1b8] sm:$0xff] }
  0x45   :  { %490 = vst [vmem:[#allocation8 + $0x180] sm:$0xff] %v414_v59  ;;  %v343_v11 = vadd.f32 %v267_v9, %v191_v8  ;;  %v192_v13 = vld [vmem:[#allocation2 + $0x1b0] sm:$0xff]  ;;  %v193_v18 = vld [vmem:[#allocation2 + $0x1b8] sm:$0xff]  ;;  %v118_v22 = vld [vmem:[#allocation7 + $0x1c0] sm:$0xff] }
  0x46   :  { %491 = vst [vmem:[#allocation8 + $0x188] sm:$0xff] %v415_v0  ;;  %v417_v10 = vadd.f32 %v341_v1, %v113_v61  ;;  %v268_v14 = vld [vmem:[#allocation5 + $0x1b0] sm:$0xff]  ;;  %v418_v15 = vadd.f32 %v342_v6, %v114_v2  ;;  %v269_v19 = vld [vmem:[#allocation5 + $0x1b8] sm:$0xff]  ;;  %v194_v23 = vld [vmem:[#allocation2 + $0x1c0] sm:$0xff] }
  0x47   :  { %492 = vst [vmem:[#allocation8 + $0x190] sm:$0xff] %v416_v5  ;;  %v344_v16 = vadd.f32 %v268_v14, %v192_v13  ;;  %v419_v20 = vadd.f32 %v343_v11, %v115_v7  ;;  %v345_v21 = vadd.f32 %v269_v19, %v193_v18  ;;  %v270_v24 = vld [vmem:[#allocation5 + $0x1c0] sm:$0xff]  ;;  %v119_v27 = vld [vmem:[#allocation7 + $0x1c8] sm:$0xff]  ;;  %v120_v32 = vld [vmem:[#allocation7 + $0x1d0] sm:$0xff] }
  0x48   :  { %493 = vst [vmem:[#allocation8 + $0x198] sm:$0xff] %v417_v10  ;;  %v346_v26 = vadd.f32 %v270_v24, %v194_v23  ;;  %v195_v28 = vld [vmem:[#allocation2 + $0x1c8] sm:$0xff]  ;;  %v196_v33 = vld [vmem:[#allocation2 + $0x1d0] sm:$0xff]  ;;  %v121_v37 = vld [vmem:[#allocation7 + $0x1d8] sm:$0xff] }
  0x49   :  { %494 = vst [vmem:[#allocation8 + $0x1a0] sm:$0xff] %v418_v15  ;;  %v420_v25 = vadd.f32 %v344_v16, %v116_v12  ;;  %v271_v29 = vld [vmem:[#allocation5 + $0x1c8] sm:$0xff]  ;;  %v421_v30 = vadd.f32 %v345_v21, %v117_v17  ;;  %v272_v34 = vld [vmem:[#allocation5 + $0x1d0] sm:$0xff]  ;;  %v197_v38 = vld [vmem:[#allocation2 + $0x1d8] sm:$0xff] }
  0x4a   :  { %495 = vst [vmem:[#allocation8 + $0x1a8] sm:$0xff] %v419_v20  ;;  %v347_v31 = vadd.f32 %v271_v29, %v195_v28  ;;  %v422_v35 = vadd.f32 %v346_v26, %v118_v22  ;;  %v348_v36 = vadd.f32 %v272_v34, %v196_v33  ;;  %v273_v39 = vld [vmem:[#allocation5 + $0x1d8] sm:$0xff]  ;;  %v122_v42 = vld [vmem:[#allocation7 + $0x1e0] sm:$0xff]  ;;  %v123_v47 = vld [vmem:[#allocation7 + $0x1e8] sm:$0xff] }
  0x4b   :  { %496 = vst [vmem:[#allocation8 + $0x1b0] sm:$0xff] %v420_v25  ;;  %v349_v41 = vadd.f32 %v273_v39, %v197_v38  ;;  %v198_v43 = vld [vmem:[#allocation2 + $0x1e0] sm:$0xff]  ;;  %v199_v48 = vld [vmem:[#allocation2 + $0x1e8] sm:$0xff]  ;;  %v124_v52 = vld [vmem:[#allocation7 + $0x1f0] sm:$0xff] }
  0x4c   :  { %497 = vst [vmem:[#allocation8 + $0x1b8] sm:$0xff] %v421_v30  ;;  %v423_v40 = vadd.f32 %v347_v31, %v119_v27  ;;  %v274_v44 = vld [vmem:[#allocation5 + $0x1e0] sm:$0xff]  ;;  %v424_v45 = vadd.f32 %v348_v36, %v120_v32  ;;  %v275_v49 = vld [vmem:[#allocation5 + $0x1e8] sm:$0xff]  ;;  %v200_v53 = vld [vmem:[#allocation2 + $0x1f0] sm:$0xff] }
  0x4d   :  { %498 = vst [vmem:[#allocation8 + $0x1c0] sm:$0xff] %v422_v35  ;;  %v350_v46 = vadd.f32 %v274_v44, %v198_v43  ;;  %v425_v50 = vadd.f32 %v349_v41, %v121_v37  ;;  %v351_v51 = vadd.f32 %v275_v49, %v199_v48  ;;  %v276_v54 = vld [vmem:[#allocation5 + $0x1f0] sm:$0xff]  ;;  %v125_v57 = vld [vmem:[#allocation7 + $0x1f8] sm:$0xff]  ;;  %v126_v62 = vld [vmem:[#allocation7 + $0x200] sm:$0xff] }
  0x4e   :  { %499 = vst [vmem:[#allocation8 + $0x1c8] sm:$0xff] %v423_v40  ;;  %v352_v56 = vadd.f32 %v276_v54, %v200_v53  ;;  %v201_v58 = vld [vmem:[#allocation2 + $0x1f8] sm:$0xff]  ;;  %v202_v63 = vld [vmem:[#allocation2 + $0x200] sm:$0xff]  ;;  %v127_v3 = vld [vmem:[#allocation7 + $0x208] sm:$0xff] }
  0x4f   :  { %500 = vst [vmem:[#allocation8 + $0x1d0] sm:$0xff] %v424_v45  ;;  %v426_v55 = vadd.f32 %v350_v46, %v122_v42  ;;  %v277_v59 = vld [vmem:[#allocation5 + $0x1f8] sm:$0xff]  ;;  %v427_v60 = vadd.f32 %v351_v51, %v123_v47  ;;  %v278_v0 = vld [vmem:[#allocation5 + $0x200] sm:$0xff]  ;;  %v203_v4 = vld [vmem:[#allocation2 + $0x208] sm:$0xff] }
  0x50   :  { %501 = vst [vmem:[#allocation8 + $0x1d8] sm:$0xff] %v425_v50  ;;  %v353_v61 = vadd.f32 %v277_v59, %v201_v58  ;;  %v428_v1 = vadd.f32 %v352_v56, %v124_v52  ;;  %v354_v2 = vadd.f32 %v278_v0, %v202_v63  ;;  %v279_v5 = vld [vmem:[#allocation5 + $0x208] sm:$0xff]  ;;  %v128_v8 = vld [vmem:[#allocation7 + $0x210] sm:$0xff]  ;;  %v129_v13 = vld [vmem:[#allocation7 + $0x218] sm:$0xff] }
  0x51   :  { %502 = vst [vmem:[#allocation8 + $0x1e0] sm:$0xff] %v426_v55  ;;  %v355_v7 = vadd.f32 %v279_v5, %v203_v4  ;;  %v204_v9 = vld [vmem:[#allocation2 + $0x210] sm:$0xff]  ;;  %v205_v14 = vld [vmem:[#allocation2 + $0x218] sm:$0xff]  ;;  %v130_v18 = vld [vmem:[#allocation7 + $0x220] sm:$0xff] }
  0x52   :  { %503 = vst [vmem:[#allocation8 + $0x1e8] sm:$0xff] %v427_v60  ;;  %v429_v6 = vadd.f32 %v353_v61, %v125_v57  ;;  %v280_v10 = vld [vmem:[#allocation5 + $0x210] sm:$0xff]  ;;  %v430_v11 = vadd.f32 %v354_v2, %v126_v62  ;;  %v281_v15 = vld [vmem:[#allocation5 + $0x218] sm:$0xff]  ;;  %v206_v19 = vld [vmem:[#allocation2 + $0x220] sm:$0xff] }
  0x53   :  { %504 = vst [vmem:[#allocation8 + $0x1f0] sm:$0xff] %v428_v1  ;;  %v356_v12 = vadd.f32 %v280_v10, %v204_v9  ;;  %v431_v16 = vadd.f32 %v355_v7, %v127_v3  ;;  %v357_v17 = vadd.f32 %v281_v15, %v205_v14  ;;  %v282_v20 = vld [vmem:[#allocation5 + $0x220] sm:$0xff]  ;;  %v131_v23 = vld [vmem:[#allocation7 + $0x228] sm:$0xff]  ;;  %v132_v28 = vld [vmem:[#allocation7 + $0x230] sm:$0xff] }
  0x54   :  { %505 = vst [vmem:[#allocation8 + $0x1f8] sm:$0xff] %v429_v6  ;;  %v358_v22 = vadd.f32 %v282_v20, %v206_v19  ;;  %v207_v24 = vld [vmem:[#allocation2 + $0x228] sm:$0xff]  ;;  %v208_v29 = vld [vmem:[#allocation2 + $0x230] sm:$0xff]  ;;  %v133_v33 = vld [vmem:[#allocation7 + $0x238] sm:$0xff] }
  0x55   :  { %506 = vst [vmem:[#allocation8 + $0x200] sm:$0xff] %v430_v11  ;;  %v432_v21 = vadd.f32 %v356_v12, %v128_v8  ;;  %v283_v25 = vld [vmem:[#allocation5 + $0x228] sm:$0xff]  ;;  %v433_v26 = vadd.f32 %v357_v17, %v129_v13  ;;  %v284_v30 = vld [vmem:[#allocation5 + $0x230] sm:$0xff]  ;;  %v209_v34 = vld [vmem:[#allocation2 + $0x238] sm:$0xff] }
  0x56   :  { %507 = vst [vmem:[#allocation8 + $0x208] sm:$0xff] %v431_v16  ;;  %v359_v27 = vadd.f32 %v283_v25, %v207_v24  ;;  %v434_v31 = vadd.f32 %v358_v22, %v130_v18  ;;  %v360_v32 = vadd.f32 %v284_v30, %v208_v29  ;;  %v285_v35 = vld [vmem:[#allocation5 + $0x238] sm:$0xff]  ;;  %v134_v38 = vld [vmem:[#allocation7 + $0x240] sm:$0x7]  ;;  %v135_v42 = vld [vmem:[#allocation7 + $0x248] sm:$0x7] }
  0x57   :  { %508 = vst [vmem:[#allocation8 + $0x210] sm:$0xff] %v432_v21  ;;  %v361_v37 = vadd.f32 %v285_v35, %v209_v34  ;;  %v210_v39 = vld [vmem:[#allocation2 + $0x240] sm:$0x7]  ;;  %v211_v45 = vld [vmem:[#allocation2 + $0x248] sm:$0x7] }
  0x58   :  { %509 = vst [vmem:[#allocation8 + $0x218] sm:$0xff] %v433_v26  ;;  %v435_v36 = vadd.f32 %v359_v27, %v131_v23  ;;  %v436_v40 = vadd.f32 %v360_v32, %v132_v28  ;;  %v286_v41 = vld [vmem:[#allocation5 + $0x240] sm:$0x7]  ;;  %v287_v46 = vld [vmem:[#allocation5 + $0x248] sm:$0x7] }
  0x59   :  { %510 = vst [vmem:[#allocation8 + $0x220] sm:$0xff] %v434_v31  ;;  %v437_v43 = vadd.f32 %v361_v37, %v133_v33  ;;  %v362_v44 = vadd.f32 %v286_v41, %v210_v39  ;;  %v363_v47 = vadd.f32 %v287_v46, %v211_v45  ;;  %v212_v48 = vld [vmem:[#allocation2 + $0x250] sm:$0x7]  ;;  %v137_v54 = vld [vmem:[#allocation7 + $0x258] sm:$0x7] }
  0x5a   :  { %511 = vst [vmem:[#allocation8 + $0x228] sm:$0xff] %v435_v36  ;;  %v136_v50 = vld [vmem:[#allocation7 + $0x250] sm:$0x7]  ;;  %v213_v55 = vld [vmem:[#allocation2 + $0x258] sm:$0x7] }
  0x5b   :  { %512 = vst [vmem:[#allocation8 + $0x230] sm:$0xff] %v436_v40  ;;  %v438_v49 = vadd.f32 %v362_v44, %v134_v38  ;;  %v288_v51 = vld [vmem:[#allocation5 + $0x250] sm:$0x7]  ;;  %v439_v52 = vadd.f32 %v363_v47, %v135_v42  ;;  %v289_v56 = vld [vmem:[#allocation5 + $0x258] sm:$0x7] }
  0x5c   :  { %513 = vst [vmem:[#allocation8 + $0x238] sm:$0xff] %v437_v43  ;;  %v364_v53 = vadd.f32 %v288_v51, %v212_v48  ;;  %v365_v57 = vadd.f32 %v289_v56, %v213_v55 }
  0x5d   :  { %514 = vst [vmem:[#allocation8 + $0x240] sm:$0x7] %v438_v49 }
  0x5e   :  { %515 = vst [vmem:[#allocation8 + $0x248] sm:$0x7] %v439_v52  ;;  %v440_v58 = vadd.f32 %v364_v53, %v136_v50  ;;  %v441_v59 = vadd.f32 %v365_v57, %v137_v54 }
  0x60   :  { %516 = vst [vmem:[#allocation8 + $0x250] sm:$0x7] %v440_v58 }
  0x61   :  { %517 = vst [vmem:[#allocation8 + $0x258] sm:$0x7] %v441_v59 }
  0x62   :  { %530 = dma.vmem_to_hbm [thread:$0]  %s523_s30, 9728, %s525_s28, [#allocation4], %s647_s20, %s647_s20, %s648_s21  }
  0x63   :  { %644 = dma.done.wait [#allocation4], 9728  }
  0x64   :  { %645 = vsyncadd [#allocation4], 4294957568 }
  0x65   :  { %535 = vsyncpa [#allocation3], 1 }
  0x66   :  { %536 = vsyncpa [#allocation6], 1 }
  0x67   :  { %537 = vsyncpa [#allocation4], 1 }

</bundles_post_ra>
